<compile_context>
chip_gen: v7x
topology: tpu7x:2x2x1
jax: 0.10.0
libtpu: 0.0.40
codegen_flags: <defaults>
</compile_context>

<pallas_src>
import functools

import jax
import jax.numpy as jnp
from jax.experimental import pallas as pl
from jax.experimental.pallas import tpu as pltpu


def _round_up(x, m):
    return ((x + m - 1) // m) * m


def _choose_tile(batch, block_rows):
    """Pick a row/col tile (multiple of 8) that limits padding waste."""
    full = _round_up(max(batch, 1), 8)
    if full <= block_rows:
        return full                      # one row block per half, no waste
    cands = [t for t in (512, 256, 128) if t <= block_rows]
    if not cands:
        cands = [_round_up(block_rows, 8)]
    # minimize padded rows per half; on ties prefer the larger tile
    return min(cands, key=lambda t: (_round_up(batch, t) - batch, -t))


def _nt_xent_kernel(row_ref, col_ref, loss_ref, acc_ref, pos_ref, *,
                    inv_temp, batch, b_pad, tm, tn, nb):
    # Grid positions are read once here (NOT inside pl.when bodies).
    i = pl.program_id(0)
    j = pl.program_id(1)
    last_j = pl.num_programs(1) - 1
    partner_j = jnp.where(i < nb, i + nb, i - nb)   # (i + nb) mod 2*nb

    @pl.when(j == 0)
    def _init():
        acc_ref[...] = jnp.zeros_like(acc_ref)
        pos_ref[...] = jnp.zeros_like(pos_ref)

    # (tm, tn) cosine-similarity tile: rows/cols are already unit-normalized,
    # contract the feature (lane) axis of BOTH operands on the MXU.
    sim = jax.lax.dot_general(
        row_ref[...], col_ref[...],
        dimension_numbers=(((1,), (1,)), ((), ())),
        preferred_element_type=jnp.float32)

    # Online row-sum of exp(sim / T) with the self-similarity diagonal masked
    # out in-tile (global row index == global col index).
    row_g = i * tm + jax.lax.broadcasted_iota(jnp.int32, (tm, tn), 0)
    col_g = j * tn + jax.lax.broadcasted_iota(jnp.int32, (tm, tn), 1)
    e = jnp.where(row_g == col_g, 0.0, jnp.exp(sim * inv_temp))
    acc_ref[...] += jnp.sum(e, axis=1, keepdims=True)

    # Positives (z_i <-> z_j pairing) sit on the LOCAL diagonal of the tile
    # whose column block is the partner block of this row block (tm == tn).
    @pl.when(j == partner_j)
    def _grab_positives():
        local_diag = (jax.lax.broadcasted_iota(jnp.int32, (tm, tn), 0)
                      == jax.lax.broadcasted_iota(jnp.int32, (tm, tn), 1))
        pos_ref[...] = jnp.sum(jnp.where(local_diag, sim, 0.0),
                               axis=1, keepdims=True)

    @pl.when(j == last_j)
    def _finalize():
        # Each padded (all-zero) column contributed exactly exp(0) == 1.
        num_pad_cols = 2.0 * (b_pad - batch)
        denom = acc_ref[...] - num_pad_cols
        # log-space NT-Xent: -log(exp(pos/T) / denom) = -(pos/T - log(denom))
        per_row = -(pos_ref[...] * inv_temp - jnp.log(denom))
        # Zero padded rows so the wrapper-side sum is exact.
        g = i * tm + jax.lax.broadcasted_iota(jnp.int32, (tm, 1), 0)
        valid = (g < batch) | ((g >= b_pad) & (g < b_pad + batch))
        loss_ref[...] = jnp.where(valid, per_row, 0.0)


def contrastive_loss(emb_i, emb_j, *, temperature=0.5, block_rows=256):
    assert emb_i.ndim == 2 and emb_i.shape == emb_j.shape
    batch, dim = emb_i.shape

    tm = _choose_tile(batch, block_rows)     # row tile (multiple of 8)
    tn = tm                                  # col tile (== tm so positives are a diagonal)
    b_pad = _round_up(batch, tm)             # pad each half so tm | b_pad
    d_pad = _round_up(dim, 128)              # lane-align the feature axis
    n_rows = 2 * b_pad
    nb = b_pad // tm                         # row blocks per half

    def _normalize(x):
        x = x.astype(jnp.float32)
        n = jnp.sqrt(jnp.sum(x * x, axis=1, keepdims=True))
        return x / jnp.maximum(n, 1e-12)     # matches F.normalize(x, dim=1)

    def _pad(x):
        return jnp.pad(x, ((0, b_pad - batch), (0, d_pad - dim)))

    # Normalize once in XLA, then pad (zero rows/cols stay zero) — layout
    # plumbing + one pass, not per-grid-step work.
    reps = jnp.concatenate([_pad(_normalize(emb_i)), _pad(_normalize(emb_j))],
                           axis=0)           # (2*b_pad, d_pad), unit rows

    kernel = functools.partial(
        _nt_xent_kernel,
        inv_temp=1.0 / float(temperature),
        batch=batch, b_pad=b_pad, tm=tm, tn=tn, nb=nb)

    per_row = pl.pallas_call(
        kernel,
        out_shape=jax.ShapeDtypeStruct((n_rows, 1), jnp.float32),
        grid=(n_rows // tm, n_rows // tn),
        in_specs=[
            pl.BlockSpec((tm, d_pad), lambda i, j: (i, 0)),   # row block
            pl.BlockSpec((tn, d_pad), lambda i, j: (j, 0)),   # column block
        ],
        out_specs=pl.BlockSpec((tm, 1), lambda i, j: (i, 0)),
        scratch_shapes=[
            pltpu.VMEM((tm, 1), jnp.float32),   # running row-sum of exp(sim/T)
            pltpu.VMEM((tm, 1), jnp.float32),   # positives (partner diagonal)
        ],
        compiler_params=pltpu.CompilerParams(
            dimension_semantics=("parallel", "arbitrary"),
            vmem_limit_bytes=48 * 1024 * 1024),
    )(reps, reps)

    return jnp.sum(per_row) / (2.0 * batch)


def _reference_loss(emb_i, emb_j, temperature=0.5):
    # Pure-JAX reference mirroring the PyTorch module.
    def norm(x):
        n = jnp.sqrt(jnp.sum(x * x, axis=1, keepdims=True))
        return x / jnp.maximum(n, 1e-12)

    b = emb_i.shape[0]
    reps = jnp.concatenate([norm(emb_i), norm(emb_j)], axis=0)
    sim = jnp.matmul(reps, reps.T, precision=jax.lax.Precision.HIGHEST)
    sim_ij = jnp.diagonal(sim, offset=b)
    sim_ji = jnp.diagonal(sim, offset=-b)
    positives = jnp.concatenate([sim_ij, sim_ji], axis=0)
    neg_mask = 1.0 - jnp.eye(2 * b, dtype=jnp.float32)
    nominator = jnp.exp(positives / temperature)
    denominator = jnp.sum(neg_mask * jnp.exp(sim / temperature), axis=1)
    return jnp.sum(-jnp.log(nominator / denominator)) / (2.0 * b)


if __name__ == "__main__":
    key = jax.random.PRNGKey(0)
    k1, k2, k3, k4 = jax.random.split(key, 4)

    # Primary small case (matches the module's expected usage shapes).
    batch_size, hidden = 4, 32
    emb_i = jax.random.normal(k1, (batch_size, hidden), dtype=jnp.float32)
    emb_j = jax.random.normal(k2, (batch_size, hidden), dtype=jnp.float32)

    loss = contrastive_loss(emb_i, emb_j, temperature=0.5)
    jax.block_until_ready(loss)
    ref = _reference_loss(emb_i, emb_j, temperature=0.5)
    assert jnp.allclose(loss, ref, atol=1e-5, rtol=1e-5), (loss, ref)

    # Multi-tile case: forces a (4, 4) grid (online accumulation over column
    # blocks, partner-block wraparound, in-tile diagonal masking, feature
    # padding 40 -> 128).
    b2, h2 = 16, 40
    e_i2 = jax.random.normal(k3, (b2, h2), dtype=jnp.float32)
    e_j2 = jax.random.normal(k4, (b2, h2), dtype=jnp.float32)
    loss2 = contrastive_loss(e_i2, e_j2, temperature=0.5, block_rows=8)
    jax.block_until_ready(loss2)
    ref2 = _reference_loss(e_i2, e_j2, temperature=0.5)
    assert jnp.allclose(loss2, ref2, atol=1e-5, rtol=1e-5), (loss2, ref2)

    print("KERNEL_OK")
</pallas_src>

<mosaic_0001>
module attributes {stable_mosaic.version = 11 : i64} {
  func.func @_nt_xent_kernel(%arg0: i32, %arg1: i32, %arg2: memref<8x128xf32, #tpu.memory_space<vmem>>, %arg3: memref<8x128xf32, #tpu.memory_space<vmem>>, %arg4: memref<8x1xf32, #tpu.memory_space<vmem>>, %arg5: memref<8x1xf32, #tpu.memory_space<vmem>>, %arg6: memref<8x1xf32, #tpu.memory_space<vmem>>) attributes {dimension_semantics = [#tpu.dimension_semantics<parallel>, #tpu.dimension_semantics<arbitrary>], iteration_bounds = array<i64: 2, 2>, scalar_prefetch = 0 : i64, scratch_operands = 2 : i64, tpu.core_type = #tpu.core_type<tc>, window_params = [{transform_indices = @transform_0, window_bounds = array<i64: 8, 128>}, {transform_indices = @transform_1, window_bounds = array<i64: 8, 128>}, {transform_indices = @transform_2, window_bounds = array<i64: 8, 1>}]} {
    %c1_i32 = arith.constant 1 : i32
    %0 = arith.cmpi slt, %arg0, %c1_i32 : i32
    %c1_i32_0 = arith.constant 1 : i32
    %1 = arith.addi %arg0, %c1_i32_0 : i32
    %c1_i32_1 = arith.constant 1 : i32
    %2 = arith.subi %arg0, %c1_i32_1 : i32
    %3 = arith.select %0, %1, %2 : i32
    %c0_i32 = arith.constant 0 : i32
    %4 = arith.cmpi eq, %arg1, %c0_i32 : i32
    %5 = arith.extui %4 : i1 to i32
    %c0_i32_2 = arith.constant 0 : i32
    %6 = arith.cmpi ne, %5, %c0_i32_2 : i32
    scf.if %6 {
      %cst_17 = arith.constant 0.000000e+00 : f32
      %35 = vector.broadcast %cst_17 : f32 to vector<8x1xf32>
      %c0_18 = arith.constant 0 : index
      %c0_19 = arith.constant 0 : index
      %36 = vector.load %arg5[%c0_18, %c0_19] : memref<8x1xf32, #tpu.memory_space<vmem>>, vector<8x1xf32>
      tpu.vector_store %arg5[%c0_18, %c0_19], %35 {strides = array<i32>} : memref<8x1xf32, #tpu.memory_space<vmem>>, vector<8x1xf32>,
      %cst_20 = arith.constant 0.000000e+00 : f32
      %37 = vector.broadcast %cst_20 : f32 to vector<8x1xf32>
      %c0_21 = arith.constant 0 : index
      %c0_22 = arith.constant 0 : index
      %38 = vector.load %arg6[%c0_21, %c0_22] : memref<8x1xf32, #tpu.memory_space<vmem>>, vector<8x1xf32>
      tpu.vector_store %arg6[%c0_21, %c0_22], %37 {strides = array<i32>} : memref<8x1xf32, #tpu.memory_space<vmem>>, vector<8x1xf32>,
    } else {
    }
    %c0 = arith.constant 0 : index
    %c0_3 = arith.constant 0 : index
    %7 = vector.load %arg2[%c0, %c0_3] : memref<8x128xf32, #tpu.memory_space<vmem>>, vector<8x128xf32>
    %c0_4 = arith.constant 0 : index
    %c0_5 = arith.constant 0 : index
    %8 = vector.load %arg3[%c0_4, %c0_5] : memref<8x128xf32, #tpu.memory_space<vmem>>, vector<8x128xf32>
    %cst = arith.constant dense<0.000000e+00> : vector<8x8xf32>
    %9 = tpu.matmul %7, %8, %cst {dimension_numbers = #tpu.dot_dimension_numbers<[1], [1], [0], [0], [0, 0, 1, 0], [], []>} : vector<8x128xf32>, vector<8x128xf32>, vector<8x8xf32> -> vector<8x8xf32>
    %c8_i32 = arith.constant 8 : i32
    %10 = arith.muli %arg0, %c8_i32 : i32
    %11 = tpu.iota {dimensions = array<i32: 0>} : vector<8x8xi32>
    %12 = vector.broadcast %10 : i32 to vector<8x8xi32>
    %13 = arith.addi %12, %11 : vector<8x8xi32>
    %c8_i32_6 = arith.constant 8 : i32
    %14 = arith.muli %arg1, %c8_i32_6 : i32
    %15 = tpu.iota {dimensions = array<i32: 1>} : vector<8x8xi32>
    %16 = vector.broadcast %14 : i32 to vector<8x8xi32>
    %17 = arith.addi %16, %15 : vector<8x8xi32>
    %18 = arith.cmpi eq, %13, %17 : vector<8x8xi32>
    %cst_7 = arith.constant 2.000000e+00 : f32
    %19 = vector.broadcast %cst_7 : f32 to vector<8x8xf32>
    %20 = arith.mulf %9, %19 : vector<8x8xf32>
    %21 = math.exp %20 : vector<8x8xf32>
    %cst_8 = arith.constant 0.000000e+00 : f32
    %22 = vector.broadcast %cst_8 : f32 to vector<8x8xf32>
    %23 = arith.select %18, %22, %21 : vector<8x8xi1>, vector<8x8xf32>
    %c0_9 = arith.constant 0 : index
    %c0_10 = arith.constant 0 : index
    %24 = vector.load %arg5[%c0_9, %c0_10] : memref<8x1xf32, #tpu.memory_space<vmem>>, vector<8x1xf32>
    %cst_11 = arith.constant dense<0.000000e+00> : vector<8xf32>
    %25 = vector.multi_reduction <add>, %23, %cst_11 [1] : vector<8x8xf32> to vector<8xf32>
    %26 = vector.shape_cast %25 : vector<8xf32> to vector<8x1xf32>
    %27 = arith.addf %24, %26 : vector<8x1xf32>
    %c0_12 = arith.constant 0 : index
    %c0_13 = arith.constant 0 : index
    %28 = vector.load %arg5[%c0_12, %c0_13] : memref<8x1xf32, #tpu.memory_space<vmem>>, vector<8x1xf32>
    tpu.vector_store %arg5[%c0_12, %c0_13], %27 {strides = array<i32>} : memref<8x1xf32, #tpu.memory_space<vmem>>, vector<8x1xf32>,
    %29 = arith.cmpi eq, %arg1, %3 : i32
    %30 = arith.extui %29 : i1 to i32
    %c0_i32_14 = arith.constant 0 : i32
    %31 = arith.cmpi ne, %30, %c0_i32_14 : i32
    scf.if %31 {
      %35 = tpu.iota {dimensions = array<i32: 0>} : vector<8x8xi32>
      %36 = tpu.iota {dimensions = array<i32: 1>} : vector<8x8xi32>
      %37 = arith.cmpi eq, %35, %36 : vector<8x8xi32>
      %cst_17 = arith.constant 0.000000e+00 : f32
      %38 = vector.broadcast %cst_17 : f32 to vector<8x8xf32>
      %39 = arith.select %37, %9, %38 : vector<8x8xi1>, vector<8x8xf32>
      %cst_18 = arith.constant dense<0.000000e+00> : vector<8xf32>
      %40 = vector.multi_reduction <add>, %39, %cst_18 [1] : vector<8x8xf32> to vector<8xf32>
      %41 = vector.shape_cast %40 : vector<8xf32> to vector<8x1xf32>
      %c0_19 = arith.constant 0 : index
      %c0_20 = arith.constant 0 : index
      %42 = vector.load %arg6[%c0_19, %c0_20] : memref<8x1xf32, #tpu.memory_space<vmem>>, vector<8x1xf32>
      tpu.vector_store %arg6[%c0_19, %c0_20], %41 {strides = array<i32>} : memref<8x1xf32, #tpu.memory_space<vmem>>, vector<8x1xf32>,
    } else {
    }
    %c1_i32_15 = arith.constant 1 : i32
    %32 = arith.cmpi eq, %arg1, %c1_i32_15 : i32
    %33 = arith.extui %32 : i1 to i32
    %c0_i32_16 = arith.constant 0 : i32
    %34 = arith.cmpi ne, %33, %c0_i32_16 : i32
    scf.if %34 {
      %c0_17 = arith.constant 0 : index
      %c0_18 = arith.constant 0 : index
      %35 = vector.load %arg5[%c0_17, %c0_18] : memref<8x1xf32, #tpu.memory_space<vmem>>, vector<8x1xf32>
      %cst_19 = arith.constant 8.000000e+00 : f32
      %36 = vector.broadcast %cst_19 : f32 to vector<8x1xf32>
      %37 = arith.subf %35, %36 : vector<8x1xf32>
      %c0_20 = arith.constant 0 : index
      %c0_21 = arith.constant 0 : index
      %38 = vector.load %arg6[%c0_20, %c0_21] : memref<8x1xf32, #tpu.memory_space<vmem>>, vector<8x1xf32>
      %cst_22 = arith.constant 2.000000e+00 : f32
      %39 = vector.broadcast %cst_22 : f32 to vector<8x1xf32>
      %40 = arith.mulf %38, %39 : vector<8x1xf32>
      %41 = math.log %37 : vector<8x1xf32>
      %42 = arith.subf %40, %41 : vector<8x1xf32>
      %cst_23 = arith.constant 0.000000e+00 : f32
      %43 = vector.broadcast %cst_23 : f32 to vector<8x1xf32>
      %44 = arith.subf %43, %42 : vector<8x1xf32>
      %c8_i32_24 = arith.constant 8 : i32
      %45 = arith.muli %arg0, %c8_i32_24 : i32
      %46 = tpu.iota {dimensions = array<i32: 0>} : vector<8x1xi32>
      %47 = vector.broadcast %45 : i32 to vector<8x1xi32>
      %48 = arith.addi %47, %46 : vector<8x1xi32>
      %c4_i32 = arith.constant 4 : i32
      %49 = vector.broadcast %c4_i32 : i32 to vector<8x1xi32>
      %50 = arith.cmpi slt, %48, %49 : vector<8x1xi32>
      %c8_i32_25 = arith.constant 8 : i32
      %51 = vector.broadcast %c8_i32_25 : i32 to vector<8x1xi32>
      %52 = arith.cmpi sge, %48, %51 : vector<8x1xi32>
      %c12_i32 = arith.constant 12 : i32
      %53 = vector.broadcast %c12_i32 : i32 to vector<8x1xi32>
      %54 = arith.cmpi slt, %48, %53 : vector<8x1xi32>
      %55 = arith.andi %52, %54 : vector<8x1xi1>
      %56 = arith.ori %50, %55 : vector<8x1xi1>
      %cst_26 = arith.constant 0.000000e+00 : f32
      %57 = vector.broadcast %cst_26 : f32 to vector<8x1xf32>
      %58 = arith.select %56, %44, %57 : vector<8x1xi1>, vector<8x1xf32>
      %c0_27 = arith.constant 0 : index
      %c0_28 = arith.constant 0 : index
      %59 = vector.load %arg4[%c0_27, %c0_28] : memref<8x1xf32, #tpu.memory_space<vmem>>, vector<8x1xf32>
      tpu.vector_store %arg4[%c0_27, %c0_28], %58 {strides = array<i32>} : memref<8x1xf32, #tpu.memory_space<vmem>>, vector<8x1xf32>,
    } else {
    }
    return
  }
  func.func @transform_0(%arg0: i32, %arg1: i32) -> (i32, i32) {
    %c0_i32 = arith.constant 0 : i32
    %c0_i32_0 = arith.constant 0 : i32
    return %arg0, %c0_i32 : i32, i32
  }
  func.func @transform_1(%arg0: i32, %arg1: i32) -> (i32, i32) {
    %c0_i32 = arith.constant 0 : i32
    %c0_i32_0 = arith.constant 0 : i32
    return %arg1, %c0_i32 : i32, i32
  }
  func.func @transform_2(%arg0: i32, %arg1: i32) -> (i32, i32) {
    %c0_i32 = arith.constant 0 : i32
    %c0_i32_0 = arith.constant 0 : i32
    return %arg0, %c0_i32 : i32, i32
  }
}

</mosaic_0001>

<bundles_post_ra>
// kernel: tpu_custom_call.1
= control target key start
LH: loop header
LB: loop body
LE: loop exit
PB: predicated region body
PF: predicated region fallthrough
CT: control target
= control target key end

     0   :  { %7 = vsyncpa [#allocation5], 0  ;;  %s1022_s0 = inlined_call_operand.hbm [shape: f32[16,128], index: 0, kind: input, shape index: {}]   ;;  %s1023_s1 = inlined_call_operand.hbm [shape: f32[16,128], index: 1, kind: input, shape index: {}]   ;;  %s1024_s2 = inlined_call_operand.vmem [shape: f32[16,1], index: 2, kind: output, shape index: {}]  }
   0x1   :  { %9 = vsyncpa [#allocation5 + $0x1], 0 }
   0x2   :  { %10 = vsyncpa [#allocation7], 0 }
   0x3   :  { %12 = vsyncpa [#allocation7 + $0x1], 0  ;;  %s753_s9 = smov 0   ;;  %s755_s10 = smov 0  }
   0x4   :  { %s757_s11 = smov 0   ;;  %s759_s12 = smov 0  }
   0x5   :  { %s761_s13 = smov 0   ;;  %s763_s14 = smov 0  }
   0x6   :  { %s765_s15 = smov 0   ;;  %s767_s16 = smov 0  }
   0x7   :  { %s769_s17 = smov 0   ;;  %s771_s18 = smov 0  }
   0x8   :  { %s773_s19 = smov 0  }
   0x9 LB: > { %s442_s20 = sadd.s32 4294967295, %s731_s19   ;;  %s30_s21 = sadd.s32 1, %s727_s18  ;;  %s731_s19 = sphi %s773_s19, %s18_s19   ;;  %s727_s18 = sphi %s771_s18, %s1051_s18   ;;  %s723_s17 = sphi %s769_s17, %s1050_s17   ;;  %s719_s16 = sphi %s767_s16, %s1049_s16   ;;  %s715_s15 = sphi %s765_s15, %s1048_s15   ;;  %s711_s14 = sphi %s763_s14, %s1047_s14   ;;  %s707_s13 = sphi %s761_s13, %s1046_s13   ;;  %s703_s12 = sphi %s759_s12, %s1045_s12   ;;  %s699_s11 = sphi %s757_s11, %s1044_s11   ;;  %s695_s10 = sphi %s755_s10, %s1043_s10   ;;  %s691_s9 = sphi %s753_s9, %s1042_s9  }
   0xa   : > { %p44_p0 = scmp.ne.s32.totalorder %s711_s14, %s707_s13  ;;  %p1026_p1 = scmp.eq.s32.totalorder %s731_s19, 0 }
   0xb   : > { %p50_p2 = scmp.ne.s32.totalorder %s707_s13, %s703_s12  ;;  %p812_p3 = scmp.eq.s32.totalorder %s442_s20, 0 }
   0xc   : > { %p46_p4 = por %p1026_p1, %p44_p0  ;;  %p1025_p5 = scmp.lt.s32.totalorder %s731_s19, 4 }
   0xd   : > { %p821_p6 = por %p812_p3, %p50_p2  ;;  %s126_s24 = sand.u32 1, %s711_s14  }
   0xe   : > { %s446_s25 = sshll.u32 %s126_s24, 3  ;;  %s447_s26 = sshll.u32 %s727_s18, 7 }
   0xf   : > { %s1030_s23 = scalar_select %p821_p6, 1, 0 }
  0x10   : > { %s830_s29 = scalar_lea.hbm %s1022_s0, %s447_s26  ;;  %s130_s30 = scalar_lea.vmem [#allocation4], %s446_s25 }
  0x11   : > { %s137_s3 = sshll.u32 %s130_s30, 4  ;;  %p836_p7 = pnand %p1025_p5, %p46_p4  ;;  %s832_s3 = int_to_ptr.vmem [resolvable:$true] %s137_s3 }
  0x12   : > { %s127_s5 = scalar_lea.sflag [#allocation5], %s126_s24  ;;  %s577_s6 = scalar_lea.hbm %s830_s29, 128 }
  0x13   : > { %p578_p10 = scmp.ne.s32.totalorder %s830_s29, %s577_s6  ;;  %p579_p11 = pneg %p836_p7 }
  0x14   : > { %s582_s12 = scalar_lea.hbm %s1022_s0, 256  ;;  %p583_p0 = scmp.lt.u32.totalorder %s830_s29, %s1022_s0 }
  0x15   : > { %p580_p12 = pnand %p579_p11, %p578_p10  ;;  %p584_p2 = scmp.lt.u32.totalorder %s582_s12, %s577_s6 }
  0x16   : > { %p586_p5 = scmp.lt.u32.totalorder %s577_s6, %s830_s29 }
  0x17   : > { %p581_p13 = pneg %p580_p12  ;;  %p585_p4 = por %p584_p2, %p583_p0 }
  0x19   : > { %p587_p1 = por %p586_p5, %p585_p4 }
  0x1b   : > { %p588_p8 = pnand %p587_p1, %p581_p13 }
  0x1d   : > { %591 = shalt.err (!%p588_p8)
}
  0x1e   : > { %s592_s24 = scalar_lea.vmem %s832_s3, 128  ;;  %s733_s26 = smov [#allocation4]  }
  0x1f   : > { %p593_p10 = scmp.ne.s32.totalorder %s832_s3, %s592_s24  ;;  %s597_s27 = sshll.u32 %s733_s26, 4  ;;  %s598_s27 = int_to_ptr.vmem [resolvable:$false] %s597_s27 }
  0x20   : > { %s599_s28 = scalar_lea.vmem %s598_s27, 256  ;;  %p600_p6 = scmp.lt.s32.totalorder %s832_s3, %s598_s27 }
  0x21   : > { %p595_p12 = pnand %p593_p10, %p579_p11  ;;  %p601_p0 = scmp.lt.s32.totalorder %s599_s28, %s592_s24 }
  0x23   : > { %p596_p9 = pneg %p595_p12  ;;  %p602_p2 = por %p601_p0, %p600_p6 }
  0x25   : > { %p603_p5 = pnand %p602_p2, %p596_p9 }
  0x27   : > { %606 = shalt.err (!%p603_p5)
}
  0x28   : > { %477 = dma.hbm_to_vmem [thread:$0]  (!%p836_p7), %s830_s29, 128, %s832_s3, %s127_s5  }
  0x29   : > { %p1032_p1 = scmp.lt.s32.totalorder %s731_s19, 5  ;;  %p1033_p6 = scmp.ge.s32.totalorder %s731_s19, 1 }
  0x2a   : > { %s37_s4 = sadd.s32 1, %s711_s14  ;;  %s27_s6 = sadd.s32 1, %s723_s17 }
  0x2b   : > { %p871_p8 = pnand %p1033_p6, %p1032_p1  ;;  %p28_p9 = scmp.ge.s32.totalorder %s27_s6, 2 }
  0x2c   : > { %s63_s7 = sadd.s32 1, %s699_s11  ;;  %p70_p11 = scmp.ne.s32.totalorder %s699_s11, %s695_s10 }
  0x2d   : > { %p76_p13 = scmp.ne.s32.totalorder %s695_s10, %s691_s9  ;;  %s1053_s6 = smov (%p28_p9, %s27_s6), 0 }
  0x2e   : > { %s1055_s21 = smov (!%p28_p9, %s30_s21), %s727_s18  ;;  %s60_s29 = ssub.s32 %s723_s17, %s1053_s6 }
  0x2f   : > { %s144_s3 = sand.u32 1, %s699_s11   ;;  %p32_p7 = scmp.ge.s32.totalorder %s1055_s21, 2 }
  0x30   : > { %p61_p4 = scmp.eq.s32.totalorder %s60_s29, 0  ;;  %p1035_p10 = scmp.eq.s32.totalorder %s731_s19, 0 }
  0x31   : > { %p898_p0 = por %p76_p13, %p812_p3  ;;  %s1057_s21 = smov (%p32_p7, %s1055_s21), 0 }
  0x32   : > { %p892_p12 = por %p70_p11, %p1035_p10  ;;  %s34_s12 = ssub.s32 %s727_s18, %s1057_s21 }
  0x33   : > { %s1037_s9 = scalar_select %p898_p0, 1, 0 }
  0x34   : > { %s905_s8 = scalar_select %p61_p4, %s699_s11, %s63_s7  }
  0x35   : > { %s448_s20 = sshll.u32 %s144_s3, 3  ;;  %p35_p2 = scmp.eq.s32.totalorder %s34_s12, 0 }
  0x36   : > { %s449_s25 = sshll.u32 %s723_s17, 7  ;;  %s148_s24 = scalar_lea.vmem [#allocation6], %s448_s20 }
  0x37   : > { %s155_s26 = sshll.u32 %s148_s24, 4  ;;  %s916_s29 = scalar_lea.hbm %s1023_s1, %s449_s25  ;;  %s918_s26 = int_to_ptr.vmem [resolvable:$true] %s155_s26 }
  0x38   : > { %s911_s27 = scalar_select %p35_p2, %s711_s14, %s37_s4  }
  0x39   : > { %p1038_p3 = scmp.lt.s32.totalorder %s731_s19, 4  ;;  %s145_s4 = scalar_lea.sflag [#allocation7], %s144_s3 }
  0x3a   : > { %s607_s12 = scalar_lea.hbm %s916_s29, 128  ;;  %s612_s5 = scalar_lea.hbm %s1023_s1, 256 }
  0x3b   : > { %p924_p5 = pnand %p1038_p3, %p892_p12  ;;  %p608_p1 = scmp.ne.s32.totalorder %s916_s29, %s607_s12 }
  0x3c   : > { %p613_p13 = scmp.lt.u32.totalorder %s916_s29, %s1023_s1  ;;  %p614_p7 = scmp.lt.u32.totalorder %s612_s5, %s607_s12 }
  0x3d   : > { %p609_p6 = pneg %p924_p5  ;;  %p616_p10 = scmp.lt.u32.totalorder %s607_s12, %s916_s29 }
  0x3e   : > { %p615_p4 = por %p614_p7, %p613_p13 }
  0x3f   : > { %p610_p9 = pnand %p609_p6, %p608_p1 }
  0x40   : > { %p617_p12 = por %p616_p10, %p615_p4 }
  0x41   : > { %p611_p11 = pneg %p610_p9 }
  0x43   : > { %p618_p2 = pnand %p617_p12, %p611_p11 }
  0x45   : > { %621 = shalt.err (!%p618_p2)
}
  0x46   : > { %s622_s3 = scalar_lea.vmem %s918_s26, 128  ;;  %s734_s22 = smov [#allocation6]  }
  0x47   : > { %p623_p3 = scmp.ne.s32.totalorder %s918_s26, %s622_s3  ;;  %s627_s20 = sshll.u32 %s734_s22, 4  ;;  %s628_s20 = int_to_ptr.vmem [resolvable:$false] %s627_s20 }
  0x48   : > { %s629_s25 = scalar_lea.vmem %s628_s20, 256  ;;  %p630_p0 = scmp.lt.s32.totalorder %s918_s26, %s628_s20 }
  0x49   : > { %p625_p1 = pnand %p623_p3, %p609_p6  ;;  %p631_p13 = scmp.lt.s32.totalorder %s629_s25, %s622_s3 }
  0x4b   : > { %p626_p9 = pneg %p625_p1  ;;  %p632_p7 = por %p631_p13, %p630_p0 }
  0x4d   : > { %p633_p4 = pnand %p632_p7, %p626_p9 }
  0x4f   : > { %636 = shalt.err (!%p633_p4)
}
  0x50   : > { %480 = dma.hbm_to_vmem [thread:$0]  (!%p924_p5), %s916_s29, 128, %s918_s26, %s145_s4  }
  0x51   : > { %164 = sbr.rel (%p871_p8) target bundleno = 512 (0x200), region = 28  ;;  %s166_s12 = sand.u32 (!%p871_p8), 1, %s707_s13  }
  0x52   : > { %s956_s5 = sshll.u32 (!%p871_p8), %s166_s12, 3  ;;  %s167_s24 = scalar_lea.sflag (!%p871_p8), [#allocation5], %s166_s12 }
  0x53   : > { %s170_s28 = scalar_lea.vmem (!%p871_p8), [#allocation4], %s956_s5  ;;  %p1040_p6 = scmp.ne.s32.totalorder (!%p871_p8), %s1030_s23, 0 }
  0x58   : > { %682 = dma.done.wait (%p1040_p6), %s167_s24, 128  }
  0x59   : > { %684 = vsyncadd (%p1040_p6), %s167_s24, 4294967168  ;;  %s175_s7 = sand.u32 1, %s695_s10   ;;  %p1041_p8 = scmp.ne.s32.totalorder %s1037_s9, 0 }
  0x5a   : > { %s452_s26 = sshll.u32 %s175_s7, 3  ;;  %s176_s29 = scalar_lea.sflag [#allocation7], %s175_s7 }
  0x5b   : > { %s179_s30 = scalar_lea.vmem [#allocation6], %s452_s26 }
  0x5c   : > { %686 = dma.done.wait (%p1041_p8), %s176_s29, 128  }
  0x5d   : > { %688 = vsyncadd (%p1041_p8), %s176_s29, 4294967168  ;;  %p204_p0 = scmp.lt.s32.totalorder %s719_s16, 1  ;;  %s209_s4 = sadd.s32 1, %s719_s16 }
  0x5e   : > { %s454_s3 = sadd.s32 4294967295, %s719_s16  ;;  %p455_p5 = scmp.ne.s32.totalorder %s715_s15, 0 }
  0x5f   : > { %s205_s23 = scalar_select %p204_p0, %s719_s16, 1 }
  0x60   : > { %s1059_s4 = smov (!%p204_p0, %s209_s4), %s454_s3  ;;  %215 = sbr.rel (%p455_p5) target bundleno = 103 (0x67), region = 40 }
  0x61   : > { %s453_s22 = sshll.u32 %s205_s23, 3  ;;  %vm216_vm0 = vcmask (!%p455_p5), 7168   ;;  %v735_v0 = vmov (!%p455_p5), 0.0  }
  0x62   : > { %s977_s12 = scalar_lea.vmem %s1024_s2, %s453_s22  ;;  %217 = vst.msk [vmem:[#allocation2] sm:$0xff] (!%p455_p5), %vm216_vm0, %v735_v0  ;;  %218 = vst.msk [vmem:[#allocation3] sm:$0xff] (!%p455_p5), %vm216_vm0, %v735_v0 }
  0x67 PF: > { %v220_v1 = vld [vmem:[%s179_s30] sm:$0xff]  ;;  %v736_v2 = vmov 0.0   ;;  %vm737_vm1 = vmmov 0   ;;  %v219_v3 = vld [vmem:[%s170_s28] sm:$0xff]  ;;  %v292_v7 = vlaneseq  ;;  %s456_s9 = sshll.u32 %s719_s16, 3  ;;  %s457_s5 = sshll.u32 %s715_s15, 3 }
  0x68   : > { %465 = vmatprep.subr.mxu0 %v736_v2  ;;  %467 = vmatprep.mubr.msk.f32.mxu0 %vm737_vm1, %v736_v2  ;;  %v294_v11 = vstv %s456_s9  ;;  %v299_v12 = vstv %s457_s5  ;;  %vm307_vm3 = vcmask 64512   ;;  %vm312_vm4 = vcmask 7168   ;;  %p458_p11 = scmp.ne.s32.totalorder %s715_s15, %s1059_s4 }
  0x69   : > { %466 = vmatpush3.xpose.msra.mxu0 %v220_v1  ;;  %v293_v9 = vshrl.u32 %v292_v7, 7  ;;  %v298_v10 = vand.u32 127, %v292_v7  ;;  %v306_v18 = vld [vmem:[#allocation2] sm:$0xff] }
  0x6b   : > { %v295_v13 = vadd.s32 %v294_v11, %v293_v9  ;;  %v300_v14 = vadd.s32 %v299_v12, %v298_v10  ;;  %vm318_vm5 = vcmp.eq.s32.totalorder (!%p458_p11), %v293_v9, %v298_v10 }
  0x6c   : > { %468 = vmatmul.mubr.f32.vlgmr.msra.gmra.mrb[0].mxu0 %v219_v3 }
  0x6d   : > { %vm301_vm2 = vcmp.eq.s32.totalorder %v295_v13, %v300_v14 }
 0x13f   : > { %v287_v4 = vpop.f32.mrb[0].mxu0 }
 0x140   : > { %v302_v5 = vmul.f32 2.0, %v287_v4  ;;  %v469_v6 = vpop.f32.mrb[1].mxu0  ;;  %v319_v21 = vsel (!%p458_p11), %vm318_vm5, %v287_v4, 0.0 }
 0x141   : > { %v320_v22 = vsel (!%p458_p11), %vm307_vm3, %v319_v21, 0.0 }
 0x142   : > { %v303_v8 = vmul.f32 1.442695, %v302_v5 }
 0x144   : > { %573 = vpow2.f32 %v303_v8 }
 0x14e   : > { %v574_v15 = vpop.eup %573 }
 0x14f   : > { %v305_v16 = vsel %vm301_vm2, 0.0, %v574_v15 }
 0x150   : > { %v308_v17 = vsel %vm307_vm3, %v305_v16, 0.0 }
 0x151   : > { %309 = vadd.xlane.f32.xlu0 %v308_v17 }
 0x155   : > { %321 = vadd.xlane.f32.xlu0 (!%p458_p11), %v320_v22 }
 0x1db   : > { %317 = sbr.rel (%p458_p11) target bundleno = 484 (0x1e4), region = 44 }
 0x1de   : > { %v310_v19 = vpop.xlane.xlu0 %309 }
 0x1df   : > { %v311_v20 = vadd.f32 %v310_v19, %v306_v18 }
 0x1e1   : > { %313 = vst.msk [vmem:[#allocation2] sm:$0xff] %vm312_vm4, %v311_v20 }
 0x1e2   : > { %v322_v23 = vpop.xlane.xlu0 %321 }
 0x1e3   : > { %323 = vst.msk [vmem:[#allocation3] sm:$0xff] %vm312_vm4, %v322_v23 }
 0x1e4 PF: > { %p459_p10 = scmp.ne.s32.totalorder %s715_s15, 1 }
 0x1e5   : > { %vm337_vm6 = vcmp.ge.s32.totalorder (!%p459_p10), %v295_v13, 8  ;;  %vm338_vm7 = vcmp.lt.s32.totalorder (!%p459_p10), %v295_v13, 12  ;;  %vm336_vm8 = vcmp.lt.s32.totalorder (!%p459_p10), %v295_v13, 4 }
 0x1e6   : > { %327 = sbr.rel (%p459_p10) target bundleno = 512 (0x200), region = 48  ;;  %vm339_vm9 = vmand (!%p459_p10), %vm337_vm6, %vm338_vm7 }
 0x1e7   : > { %vm340_vm10 = vmor (!%p459_p10), %vm336_vm8, %vm339_vm9 }
 0x1ea   : > { %v328_v24 = vld [vmem:[#allocation2] sm:$0xff] (!%p459_p10)  ;;  %v330_v26 = vld [vmem:[#allocation3] sm:$0xff] (!%p459_p10) }
 0x1eb   : > { %v460_v25 = vadd.f32 (!%p459_p10), -8.0, %v328_v24  ;;  %v331_v27 = vmul.f32 (!%p459_p10), 2.0, %v330_v26 }
 0x1ed   : > { %575 = vlog2.f32 %v460_v25 }
 0x1f7   : > { %v576_v28 = vpop.eup %575 }
 0x1f8   : > { %v333_v29 = vmul.f32 0.6931472, %v576_v28 }
 0x1fa   : > { %v334_v30 = vsub.f32 %v331_v27, %v333_v29 }
 0x1fc   : > { %v335_v31 = vsub.f32 0.0, %v334_v30 }
 0x1fe   : > { %v341_v32 = vsel %vm340_vm10, %v335_v31, 0.0 }
 0x1ff   : > { %342 = vst.msk [vmem:[%s977_s12] sm:$0xff] %vm312_vm4, %v341_v32 }
 0x200 PF: > { %s18_s19 = sadd.s32 1, %s731_s19   ;;  %s1042_s9 = smov %s695_s10 }
 0x201   : > { %p15_p12 = scmp.ge.s32.totalorder %s18_s19, 6   ;;  %s1043_s10 = smov %s699_s11 }
 0x202   : > { %s1044_s11 = smov %s905_s8  ;;  %s1045_s12 = smov %s707_s13 }
 0x203   : > { %s1046_s13 = smov %s711_s14  ;;  %s1047_s14 = smov %s911_s27 }
 0x204   : > { %s1048_s15 = smov %s723_s17  ;;  %s1049_s16 = smov %s727_s18 }
 0x205   : > { %s1050_s17 = smov %s1053_s6  ;;  %s1051_s18 = smov %s1057_s21 }
 0x206   :  { %17 = sbr.rel (!%p15_p12) target bundleno = 9 (0x9), region = 93 }
 0x20d   :  { %362 = vsyncpa [#allocation5], 1 }
 0x20e   :  { %364 = vsyncpa [#allocation5 + $0x1], 1 }
 0x20f   :  { %365 = vsyncpa [#allocation7], 1 }
 0x210   :  { %367 = vsyncpa [#allocation7 + $0x1], 1 }

</bundles_post_ra>
